<compile_context>
chip_gen: v7x
topology: tpu7x:2x2x1
jax: 0.10.0
libtpu: 0.0.40
codegen_flags: <defaults>
</compile_context>

<pallas_src>
import functools

import jax
import jax.numpy as jnp
from jax.experimental import pallas as pl
from jax.experimental.pallas import tpu as pltpu


def _mlp_kernel(depth, *refs):
    """Transposed MLP: activations are (features, TILE_B) with batch on lanes."""
    if depth > 0:
        (x_ref, w_in_ref, b_in_ref, w_h_ref, b_h_ref,
         w_out_ref, b_out_ref, out_ref) = refs
    else:
        x_ref, w_in_ref, b_in_ref, w_out_ref, b_out_ref, out_ref = refs
        w_h_ref = b_h_ref = None

    # Input layer: (H, in) @ (in, TILE_B) -> (H, TILE_B), f32 accumulation.
    h = jnp.tanh(
        jnp.dot(w_in_ref[...], x_ref[...], preferred_element_type=jnp.float32)
        + b_in_ref[...])

    # Hidden layers (static unroll; depth is a Python int).
    for d in range(depth):
        h = jnp.tanh(
            jnp.dot(w_h_ref[d], h.astype(w_h_ref.dtype),
                    preferred_element_type=jnp.float32)
            + b_h_ref[d])

    # Output layer (no activation): (out, H) @ (H, TILE_B) -> (out, TILE_B).
    out_ref[...] = (
        jnp.dot(w_out_ref[...], h.astype(w_out_ref.dtype),
                preferred_element_type=jnp.float32)
        + b_out_ref[...])


def network_forward(x, params, depth, tile_b_max=2048):
    """Full MLP in one Pallas kernel; returns (X_pred, Y_pred, Z_pred)."""
    w_in, b_in, w_h, b_h, w_out, b_out = params
    B, input_size = x.shape
    out_size = w_out.shape[0]

    # Pad batch to a lane-friendly multiple of 128 and pick the batch tile.
    b_pad = ((B + 127) // 128) * 128
    tile_b = min(tile_b_max, b_pad)
    b_pad = ((b_pad + tile_b - 1) // tile_b) * tile_b

    # Transposed, lane-dense layout; bf16 matmul inputs (f32 accumulation).
    x_t = jnp.pad(x, ((0, b_pad - B), (0, 0))).T.astype(jnp.bfloat16)
    w_in_b = w_in.astype(jnp.bfloat16)
    w_out_b = w_out.astype(jnp.bfloat16)

    def resident(arr):  # weight/bias stays in VMEM across grid steps
        return pl.BlockSpec(arr.shape, lambda i, _n=arr.ndim: (0,) * _n)

    inputs = [x_t, w_in_b, b_in]
    in_specs = [pl.BlockSpec((input_size, tile_b), lambda i: (0, i)),
                resident(w_in_b), resident(b_in)]
    if depth > 0:
        w_h_b = w_h.astype(jnp.bfloat16)
        inputs += [w_h_b, b_h]
        in_specs += [resident(w_h_b), resident(b_h)]
    inputs += [w_out_b, b_out]
    in_specs += [resident(w_out_b), resident(b_out)]

    out_t = pl.pallas_call(
        functools.partial(_mlp_kernel, depth),
        out_shape=jax.ShapeDtypeStruct((out_size, b_pad), jnp.float32),
        grid=(b_pad // tile_b,),
        in_specs=in_specs,
        out_specs=pl.BlockSpec((out_size, tile_b), lambda i: (0, i)),
        compiler_params=pltpu.CompilerParams(
            dimension_semantics=("parallel",),
            vmem_limit_bytes=32 * 1024 * 1024),
    )(*inputs)

    out = out_t[:, :B]  # drop batch padding; shape (out_size, B)
    x_pred = out[0:1, :].T
    y_pred = out[1:2, :].T
    z_pred = out[2:3, :].T
    return x_pred, y_pred, z_pred


def xavier_uniform(key, fan_in, fan_out):
    # torch.nn.init.xavier_uniform_ (gain=1): U(-a, a), a = sqrt(6/(fi+fo)).
    # Returned in PyTorch's (out, in) layout (bound is symmetric in fi/fo).
    a = jnp.sqrt(6.0 / (fan_in + fan_out))
    return jax.random.uniform(key, (fan_out, fan_in), jnp.float32, -a, a)


def init_params(key, input_size, hidden_size, output_size, depth):
    keys = jax.random.split(key, depth + 2)
    w_in = xavier_uniform(keys[0], input_size, hidden_size)      # (H, in)
    b_in = jnp.zeros((hidden_size, 1), jnp.float32)
    if depth > 0:
        w_h = jnp.stack(
            [xavier_uniform(keys[1 + i], hidden_size, hidden_size)
             for i in range(depth)], axis=0)                     # (D, H, H)
        b_h = jnp.zeros((depth, hidden_size, 1), jnp.float32)
    else:
        w_h = None
        b_h = None
    w_out = xavier_uniform(keys[-1], hidden_size, output_size)   # (out, H)
    b_out = jnp.zeros((output_size, 1), jnp.float32)
    return w_in, b_in, w_h, b_h, w_out, b_out


if __name__ == "__main__":
    # Small deterministic example (output must have >= 3 columns).
    batch = 8
    input_size = 4
    hidden_size = 32
    output_size = 3
    depth = 2

    key = jax.random.PRNGKey(0)
    k_x, k_p = jax.random.split(key)
    x = jax.random.normal(k_x, (batch, input_size), jnp.float32)
    params = init_params(k_p, input_size, hidden_size, output_size, depth)

    x_pred, y_pred, z_pred = network_forward(x, params, depth)
    jax.block_until_ready((x_pred, y_pred, z_pred))

    # --- correctness checks -------------------------------------------------
    w_in, b_in, w_h, b_h, w_out, b_out = params

    # (a) Reference with identical dtype handling (bf16 matmul, f32 accum).
    bf = jnp.bfloat16
    h = jnp.tanh(jnp.dot(w_in.astype(bf), x.T.astype(bf),
                         preferred_element_type=jnp.float32) + b_in)
    for d in range(depth):
        h = jnp.tanh(jnp.dot(w_h[d].astype(bf), h.astype(bf),
                             preferred_element_type=jnp.float32) + b_h[d])
    ref_bf = (jnp.dot(w_out.astype(bf), h.astype(bf),
                      preferred_element_type=jnp.float32) + b_out).T

    # (b) Pure-f32 reference of the original module semantics (loose tol:
    #     bf16 matmul inputs are an intentional, accuracy-neutral tradeoff).
    h32 = jnp.tanh(x @ w_in.T + b_in.T)
    for d in range(depth):
        h32 = jnp.tanh(h32 @ w_h[d].T + b_h[d].T)
    ref_f32 = h32 @ w_out.T + b_out.T

    assert x_pred.shape == (batch, 1)
    assert y_pred.shape == (batch, 1)
    assert z_pred.shape == (batch, 1)
    out_full = jnp.concatenate([x_pred, y_pred, z_pred], axis=1)
    assert jnp.allclose(out_full, ref_bf, atol=2e-3), "bf16-matched ref mismatch"
    assert jnp.allclose(out_full, ref_f32, atol=5e-2), "f32 ref mismatch"

    print("KERNEL_OK")
</pallas_src>

<mosaic_0001>
module attributes {stable_mosaic.version = 11 : i64} {
  func.func @_mlp_kernel(%arg0: i32, %arg1: memref<4x128xbf16, #tpu.memory_space<vmem>>, %arg2: memref<32x4xbf16, #tpu.memory_space<vmem>>, %arg3: memref<32x1xf32, #tpu.memory_space<vmem>>, %arg4: memref<2x32x32xbf16, #tpu.memory_space<vmem>>, %arg5: memref<2x32x1xf32, #tpu.memory_space<vmem>>, %arg6: memref<3x32xbf16, #tpu.memory_space<vmem>>, %arg7: memref<3x1xf32, #tpu.memory_space<vmem>>, %arg8: memref<3x128xf32, #tpu.memory_space<vmem>>) attributes {dimension_semantics = [#tpu.dimension_semantics<parallel>], iteration_bounds = array<i64: 1>, scalar_prefetch = 0 : i64, scratch_operands = 0 : i64, tpu.core_type = #tpu.core_type<tc>, window_params = [{transform_indices = @transform_0, window_bounds = array<i64: 4, 128>}, {pipeline_mode = #tpu.pipeline_mode<synchronous>, transform_indices = @transform_1, window_bounds = array<i64: 32, 4>}, {pipeline_mode = #tpu.pipeline_mode<synchronous>, transform_indices = @transform_2, window_bounds = array<i64: 32, 1>}, {pipeline_mode = #tpu.pipeline_mode<synchronous>, transform_indices = @transform_3, window_bounds = array<i64: 2, 32, 32>}, {pipeline_mode = #tpu.pipeline_mode<synchronous>, transform_indices = @transform_4, window_bounds = array<i64: 2, 32, 1>}, {pipeline_mode = #tpu.pipeline_mode<synchronous>, transform_indices = @transform_5, window_bounds = array<i64: 3, 32>}, {pipeline_mode = #tpu.pipeline_mode<synchronous>, transform_indices = @transform_6, window_bounds = array<i64: 3, 1>}, {transform_indices = @transform_7, window_bounds = array<i64: 3, 128>}]} {
    %c0 = arith.constant 0 : index
    %c0_0 = arith.constant 0 : index
    %0 = vector.load %arg2[%c0, %c0_0] : memref<32x4xbf16, #tpu.memory_space<vmem>>, vector<32x4xbf16>
    %c0_1 = arith.constant 0 : index
    %c0_2 = arith.constant 0 : index
    %1 = vector.load %arg1[%c0_1, %c0_2] : memref<4x128xbf16, #tpu.memory_space<vmem>>, vector<4x128xbf16>
    %cst = arith.constant dense<0.000000e+00> : vector<32x128xf32>
    %2 = tpu.matmul %0, %1, %cst {dimension_numbers = #tpu.dot_dimension_numbers<[1], [0], [0], [1], [0, 0, 1, 1], [], []>} : vector<32x4xbf16>, vector<4x128xbf16>, vector<32x128xf32> -> vector<32x128xf32>
    %c0_3 = arith.constant 0 : index
    %c0_4 = arith.constant 0 : index
    %3 = vector.load %arg3[%c0_3, %c0_4] : memref<32x1xf32, #tpu.memory_space<vmem>>, vector<32x1xf32>
    %4 = vector.broadcast %3 : vector<32x1xf32> to vector<32x128xf32>
    %5 = arith.addf %2, %4 : vector<32x128xf32>
    %6 = math.tanh %5 : vector<32x128xf32>
    %c0_5 = arith.constant 0 : index
    %c0_6 = arith.constant 0 : index
    %c0_7 = arith.constant 0 : index
    %7 = vector.load %arg4[%c0_5, %c0_6, %c0_7] : memref<2x32x32xbf16, #tpu.memory_space<vmem>>, vector<1x32x32xbf16>
    %8 = vector.shape_cast %7 : vector<1x32x32xbf16> to vector<32x32xbf16>
    %9 = arith.truncf %6 : vector<32x128xf32> to vector<32x128xbf16>
    %cst_8 = arith.constant dense<0.000000e+00> : vector<32x128xf32>
    %10 = tpu.matmul %8, %9, %cst_8 {dimension_numbers = #tpu.dot_dimension_numbers<[1], [0], [0], [1], [0, 0, 1, 1], [], []>} : vector<32x32xbf16>, vector<32x128xbf16>, vector<32x128xf32> -> vector<32x128xf32>
    %c0_9 = arith.constant 0 : index
    %c0_10 = arith.constant 0 : index
    %c0_11 = arith.constant 0 : index
    %11 = vector.load %arg5[%c0_9, %c0_10, %c0_11] : memref<2x32x1xf32, #tpu.memory_space<vmem>>, vector<1x32x1xf32>
    %12 = vector.shape_cast %11 : vector<1x32x1xf32> to vector<32x1xf32>
    %13 = vector.broadcast %12 : vector<32x1xf32> to vector<32x128xf32>
    %14 = arith.addf %10, %13 : vector<32x128xf32>
    %15 = math.tanh %14 : vector<32x128xf32>
    %c1 = arith.constant 1 : index
    %c0_12 = arith.constant 0 : index
    %c0_13 = arith.constant 0 : index
    %16 = vector.load %arg4[%c1, %c0_12, %c0_13] : memref<2x32x32xbf16, #tpu.memory_space<vmem>>, vector<1x32x32xbf16>
    %17 = vector.shape_cast %16 : vector<1x32x32xbf16> to vector<32x32xbf16>
    %18 = arith.truncf %15 : vector<32x128xf32> to vector<32x128xbf16>
    %cst_14 = arith.constant dense<0.000000e+00> : vector<32x128xf32>
    %19 = tpu.matmul %17, %18, %cst_14 {dimension_numbers = #tpu.dot_dimension_numbers<[1], [0], [0], [1], [0, 0, 1, 1], [], []>} : vector<32x32xbf16>, vector<32x128xbf16>, vector<32x128xf32> -> vector<32x128xf32>
    %c1_15 = arith.constant 1 : index
    %c0_16 = arith.constant 0 : index
    %c0_17 = arith.constant 0 : index
    %20 = vector.load %arg5[%c1_15, %c0_16, %c0_17] : memref<2x32x1xf32, #tpu.memory_space<vmem>>, vector<1x32x1xf32>
    %21 = vector.shape_cast %20 : vector<1x32x1xf32> to vector<32x1xf32>
    %22 = vector.broadcast %21 : vector<32x1xf32> to vector<32x128xf32>
    %23 = arith.addf %19, %22 : vector<32x128xf32>
    %24 = math.tanh %23 : vector<32x128xf32>
    %c0_18 = arith.constant 0 : index
    %c0_19 = arith.constant 0 : index
    %25 = vector.load %arg6[%c0_18, %c0_19] : memref<3x32xbf16, #tpu.memory_space<vmem>>, vector<3x32xbf16>
    %26 = arith.truncf %24 : vector<32x128xf32> to vector<32x128xbf16>
    %cst_20 = arith.constant dense<0.000000e+00> : vector<3x128xf32>
    %27 = tpu.matmul %25, %26, %cst_20 {dimension_numbers = #tpu.dot_dimension_numbers<[1], [0], [0], [1], [0, 0, 1, 1], [], []>} : vector<3x32xbf16>, vector<32x128xbf16>, vector<3x128xf32> -> vector<3x128xf32>
    %c0_21 = arith.constant 0 : index
    %c0_22 = arith.constant 0 : index
    %28 = vector.load %arg7[%c0_21, %c0_22] : memref<3x1xf32, #tpu.memory_space<vmem>>, vector<3x1xf32>
    %29 = vector.broadcast %28 : vector<3x1xf32> to vector<3x128xf32>
    %30 = arith.addf %27, %29 : vector<3x128xf32>
    %c0_23 = arith.constant 0 : index
    %c0_24 = arith.constant 0 : index
    %31 = vector.load %arg8[%c0_23, %c0_24] : memref<3x128xf32, #tpu.memory_space<vmem>>, vector<3x128xf32>
    tpu.vector_store %arg8[%c0_23, %c0_24], %30 {strides = array<i32>} : memref<3x128xf32, #tpu.memory_space<vmem>>, vector<3x128xf32>,
    return
  }
  func.func @transform_0(%arg0: i32) -> (i32, i32) {
    %c0_i32 = arith.constant 0 : i32
    %c0_i32_0 = arith.constant 0 : i32
    return %c0_i32, %arg0 : i32, i32
  }
  func.func @transform_1(%arg0: i32) -> (i32, i32) {
    %c0_i32 = arith.constant 0 : i32
    %c0_i32_0 = arith.constant 0 : i32
    %c0_i32_1 = arith.constant 0 : i32
    return %c0_i32, %c0_i32_0 : i32, i32
  }
  func.func @transform_2(%arg0: i32) -> (i32, i32) {
    %c0_i32 = arith.constant 0 : i32
    %c0_i32_0 = arith.constant 0 : i32
    %c0_i32_1 = arith.constant 0 : i32
    return %c0_i32, %c0_i32_0 : i32, i32
  }
  func.func @transform_3(%arg0: i32) -> (i32, i32, i32) {
    %c0_i32 = arith.constant 0 : i32
    %c0_i32_0 = arith.constant 0 : i32
    %c0_i32_1 = arith.constant 0 : i32
    %c0_i32_2 = arith.constant 0 : i32
    return %c0_i32, %c0_i32_0, %c0_i32_1 : i32, i32, i32
  }
  func.func @transform_4(%arg0: i32) -> (i32, i32, i32) {
    %c0_i32 = arith.constant 0 : i32
    %c0_i32_0 = arith.constant 0 : i32
    %c0_i32_1 = arith.constant 0 : i32
    %c0_i32_2 = arith.constant 0 : i32
    return %c0_i32, %c0_i32_0, %c0_i32_1 : i32, i32, i32
  }
  func.func @transform_5(%arg0: i32) -> (i32, i32) {
    %c0_i32 = arith.constant 0 : i32
    %c0_i32_0 = arith.constant 0 : i32
    %c0_i32_1 = arith.constant 0 : i32
    return %c0_i32, %c0_i32_0 : i32, i32
  }
  func.func @transform_6(%arg0: i32) -> (i32, i32) {
    %c0_i32 = arith.constant 0 : i32
    %c0_i32_0 = arith.constant 0 : i32
    %c0_i32_1 = arith.constant 0 : i32
    return %c0_i32, %c0_i32_0 : i32, i32
  }
  func.func @transform_7(%arg0: i32) -> (i32, i32) {
    %c0_i32 = arith.constant 0 : i32
    %c0_i32_0 = arith.constant 0 : i32
    return %c0_i32, %arg0 : i32, i32
  }
}

</mosaic_0001>

<bundles_post_ra>
// kernel: tpu_custom_call.1
= control target key start
LH: loop header
LB: loop body
LE: loop exit
PB: predicated region body
PF: predicated region fallthrough
CT: control target
= control target key end

     0   :  { %vm74_vm0 = vcmask 1041408   ;;  %vm67_vm1 = vcmask 31744   ;;  %v525_v5 = vmov 0   ;;  %s649_s0 = inlined_call_operand.vmem [shape: bf16[4,128], index: 0, kind: input, shape index: {}]   ;;  %s650_s1 = inlined_call_operand.vmem [shape: bf16[32,4], index: 1, kind: input, shape index: {}]   ;;  %s651_s2 = inlined_call_operand.vmem [shape: f32[32,1], index: 2, kind: input, shape index: {}]   ;;  %s652_s3 = inlined_call_operand.vmem [shape: bf16[2,32,32], index: 3, kind: input, shape index: {}]   ;;  %s653_s4 = inlined_call_operand.vmem [shape: f32[2,32,1], index: 4, kind: input, shape index: {}]   ;;  %s654_s5 = inlined_call_operand.vmem [shape: bf16[3,32], index: 5, kind: input, shape index: {}]   ;;  %s655_s6 = inlined_call_operand.vmem [shape: f32[3,1], index: 6, kind: input, shape index: {}]   ;;  %s656_s7 = inlined_call_operand.hbm [shape: f32[3,128], index: 7, kind: output, shape index: {}]  }
   0x1   :  { %v32_v0 = vld [vmem:[%s649_s0] sm:$0x3]  ;;  %v472_v3 = vld [vmem:[%s650_s1 + $0x8] sm:$0xff]   ;;  %469 = vset.pattern.permute.xlu0 %v525_v5  ;;  %470 = vset.pattern.permute.xlu1 %v525_v5  ;;  %v35_v6 = vld [vmem:[%s651_s2 + $0x10] sm:$0xff] }
   0x2   :  { %v471_v1 = vld [vmem:[%s650_s1] sm:$0xff]   ;;  %464 = vmatprep.subr.msk.bf16.mxu0 %vm74_vm0, %v32_v0  ;;  %v76_v2 = vsel %vm74_vm0, %v32_v0, 0  ;;  %49 = vperm.xlu1 %470, %v35_v6   ;;  %v34_v7 = vld [vmem:[%s651_s2 + $0x8] sm:$0xff]  ;;  %v36_v8 = vld [vmem:[%s651_s2 + $0x18] sm:$0xff] }
   0x3   :  { %435 = vmatpush3.bf16.msra.mxu0 %v76_v2  ;;  %436 = vmatprep.mubr.msk.bf16.mxu0 %vm67_vm1, %v471_v1  ;;  %v33_v4 = vld [vmem:[%s651_s2] sm:$0xff]  ;;  %v138_v10 = vld [vmem:[%s653_s4 + $0x8] sm:$0xff] }
   0x4   :  { %39 = vperm.xlu0 %469, %v33_v4   ;;  %v137_v9 = vld [vmem:[%s653_s4] sm:$0xff] }
   0x6   :  { %437 = vmatmul.mubr.msk.bf16.vlgmr.msra.gmra.mrb[0].mxu0 %vm67_vm1, %v472_v3  ;;  %54 = vperm.xlu1 %470, %v36_v8  }
   0x8   :  { %44 = vperm.xlu0 %469, %v34_v7  }
   0x9   :  { %12 = vsyncpa [#allocation3], 0  ;;  %v139_v11 = vld [vmem:[%s653_s4 + $0x10] sm:$0xff]  ;;  %v140_v12 = vld [vmem:[%s653_s4 + $0x18] sm:$0xff]  ;;  %vm171_vm2 = vcmask 261120   ;;  %v526_v58 = vmov 0.0  }
   0xa   :  { %148 = vperm.xlu1 %470, %v138_v10   ;;  %v411_v13 = vld [vmem:[%s653_s4 + $0x20] sm:$0xff]  ;;  %v412_v14 = vld [vmem:[%s653_s4 + $0x28] sm:$0xff]  ;;  %v413_v15 = vld [vmem:[%s653_s4 + $0x30] sm:$0xff]  ;;  %vm527_vm3 = vmmov 0   ;;  %s528_s1 = smov [#allocation2]  }
   0xb   :  { %v414_v16 = vld [vmem:[%s653_s4 + $0x38] sm:$0xff]  ;;  %v335_v17 = vld [vmem:[%s655_s6] sm:$0x7]  ;;  %v474_v37 = vld [vmem:[%s652_s3 + $0x8] sm:$0xff]   ;;  %s391_s13 = sshll.u32 %s528_s1, 4  ;;  %s392_s13 = int_to_ptr.vmem [resolvable:$true] %s391_s13 }
   0xc   :  { %143 = vperm.xlu0 %469, %v137_v9   ;;  %v473_v18 = vld [vmem:[%s652_s3] sm:$0xff]   ;;  %v475_v38 = vld [vmem:[%s652_s3 + $0x10] sm:$0xff]   ;;  %v476_v57 = vld [vmem:[%s652_s3 + $0x18] sm:$0xff]   ;;  %s501_s14 = scalar_lea.vmem %s392_s13, 64  ;;  %p506_p1 = scmp.lt.s32.totalorder %s392_s13, %s392_s13 }
   0xd   :  { %444 = vmatprep.mubr.msk.bf16.mxu1 %vm171_vm2, %v473_v18  ;;  %452 = vmatprep.mubr.msk.bf16.mxu0 %vm171_vm2, %v475_v38  ;;  %p502_p0 = scmp.ne.s32.totalorder %s392_s13, %s501_s14  ;;  %p507_p2 = scmp.lt.s32.totalorder %s501_s14, %s501_s14 }
   0xe   :  { %158 = vperm.xlu1 %470, %v140_v12  }
   0xf   :  { %p508_p3 = por %p507_p2, %p506_p1 }
  0x10   :  { %153 = vperm.xlu0 %469, %v139_v11  }
  0x11   :  { %p509_p4 = pnand %p508_p3, %p502_p0 }
  0x12   :  { %250 = vperm.xlu1 %470, %v412_v14  }
  0x14   :  { %245 = vperm.xlu0 %469, %v411_v13   ;;  %v332_v13 = vld [vmem:[%s654_s5] sm:$0x3] }
  0x16   :  { %260 = vperm.xlu1 %470, %v414_v16  }
  0x18   :  { %255 = vperm.xlu0 %469, %v413_v15  }
  0x1c   :  { %338 = vperm.xlu0 %469, %v335_v17  }
  0x81   :  { %v50_v19 = vpop.permute.xlu1 %49 }
  0x83   :  { %v40_v20 = vpop.permute.xlu0 %39 }
  0x85   :  { %v55_v24 = vpop.permute.xlu1 %54 }
  0x87   :  { %v45_v27 = vpop.permute.xlu0 %44 }
  0x89   :  { %v149_v40 = vpop.permute.xlu1 %148 }
  0x8b   :  { %v144_v39 = vpop.permute.xlu0 %143 }
  0x8d   :  { %v159_v45 = vpop.permute.xlu1 %158 }
  0x8f   :  { %v154_v41 = vpop.permute.xlu0 %153 }
  0x91   :  { %v251_v60 = vpop.permute.xlu1 %250 }
  0x93   :  { %v246_v59 = vpop.permute.xlu0 %245 }
  0x95   :  { %v261_v1 = vpop.permute.xlu1 %260 }
  0x97   :  { %v256_v61 = vpop.permute.xlu0 %255 }
  0x9b   :  { %v339_v14 = vpop.permute.xlu0 %338 }
  0xd9   :  { %v438_v21 = vpop.f32.mrb[0].mxu0 }
  0xda   :  { %v121_v22 = vadd.f32 %v438_v21, %v50_v19  ;;  %v112_v23 = vpop.f32.mrb[1].mxu0 }
  0xdb   :  { %v113_v25 = vadd.f32 %v112_v23, %v40_v20  ;;  %v439_v26 = vpop.f32.mrb[2].mxu0 }
  0xdc   :  { %477 = vtanh.f32 %v121_v22  ;;  %v124_v28 = vadd.f32 %v439_v26, %v55_v24  ;;  %v115_v29 = vpop.f32.mrb[3].mxu0 }
  0xdd   :  { %479 = vtanh.f32 %v113_v25  ;;  %v116_v30 = vadd.f32 %v115_v29, %v45_v27 }
  0xde   :  { %481 = vtanh.f32 %v124_v28 }
  0xdf   :  { %483 = vtanh.f32 %v116_v30 }
  0xe6   :  { %v478_v31 = vpop.eup %477 }
  0xe7   :  { %v480_v32 = vpop.eup %479 }
  0xe8   :  { %v482_v33 = vpop.eup %481 }
  0xe9   :  { %v484_v34 = vpop.eup %483  ;;  %v136_v35 = vpack.c.bf16 %v482_v33, %v478_v31 }
  0xea   :  { %v135_v36 = vpack.c.bf16 %v484_v34, %v480_v32 }
  0xec   :  { %440 = vmatprep.subr.bf16.mxu1 %v135_v36 }
  0xed   :  { %441 = vmatpush3.bf16.msra.mxu1 %v135_v36 }
  0xee   :  { %442 = vmatprep.subr.bf16.mxu1 %v136_v35 }
  0xf1   :  { %443 = vmatpush3.bf16.msra.mxu1 %v136_v35 }
  0xf2   :  { %456 = vmatprep.subr.bf16.mxu1 %v526_v58 }
  0xf4   :  { %445 = vmatmul.mubr.msk.bf16.vlgmr.msra.gmra.mrb[0].mxu1 %vm171_vm2, %v474_v37 }
  0xf5   :  { %460 = vmatprep.mubr.msk.bf16.mxu1 %vm527_vm3, %v526_v58 }
 0x1c7   :  { %v446_v42 = vpop.f32.mrb[0].mxu1 }
 0x1c8   :  { %v221_v43 = vadd.f32 %v446_v42, %v154_v41  ;;  %v212_v44 = vpop.f32.mrb[1].mxu1 }
 0x1c9   :  { %v213_v46 = vadd.f32 %v212_v44, %v144_v39  ;;  %v447_v47 = vpop.f32.mrb[2].mxu1 }
 0x1ca   :  { %485 = vtanh.f32 %v221_v43  ;;  %v224_v48 = vadd.f32 %v447_v47, %v159_v45  ;;  %v215_v49 = vpop.f32.mrb[3].mxu1 }
 0x1cb   :  { %487 = vtanh.f32 %v213_v46  ;;  %v216_v50 = vadd.f32 %v215_v49, %v149_v40 }
 0x1cc   :  { %489 = vtanh.f32 %v224_v48 }
 0x1cd   :  { %491 = vtanh.f32 %v216_v50 }
 0x1d4   :  { %v486_v51 = vpop.eup %485 }
 0x1d5   :  { %v488_v52 = vpop.eup %487 }
 0x1d6   :  { %v490_v53 = vpop.eup %489 }
 0x1d7   :  { %v492_v54 = vpop.eup %491  ;;  %v237_v55 = vpack.c.bf16 %v490_v53, %v486_v51 }
 0x1d8   :  { %v236_v56 = vpack.c.bf16 %v492_v54, %v488_v52 }
 0x1da   :  { %448 = vmatprep.subr.bf16.mxu0 %v236_v56 }
 0x1db   :  { %449 = vmatpush3.bf16.msra.mxu0 %v236_v56 }
 0x1dc   :  { %450 = vmatprep.subr.bf16.mxu0 %v237_v55 }
 0x1df   :  { %451 = vmatpush3.bf16.msra.mxu0 %v237_v55 }
 0x1e2   :  { %453 = vmatmul.mubr.msk.bf16.vlgmr.msra.gmra.mrb[4].mxu0 %vm171_vm2, %v476_v57 }
 0x2b5   :  { %v454_v62 = vpop.f32.mrb[4].mxu0 }
 0x2b6   :  { %v322_v63 = vadd.f32 %v454_v62, %v256_v61  ;;  %v313_v0 = vpop.f32.mrb[5].mxu0 }
 0x2b7   :  { %v314_v2 = vadd.f32 %v313_v0, %v246_v59  ;;  %v455_v3 = vpop.f32.mrb[6].mxu0 }
 0x2b8   :  { %493 = vtanh.f32 %v322_v63  ;;  %v325_v4 = vadd.f32 %v455_v3, %v261_v1  ;;  %v316_v5 = vpop.f32.mrb[7].mxu0 }
 0x2b9   :  { %495 = vtanh.f32 %v314_v2  ;;  %v317_v6 = vadd.f32 %v316_v5, %v251_v60 }
 0x2ba   :  { %497 = vtanh.f32 %v325_v4 }
 0x2bb   :  { %499 = vtanh.f32 %v317_v6 }
 0x2c2   :  { %v494_v7 = vpop.eup %493 }
 0x2c3   :  { %v496_v8 = vpop.eup %495 }
 0x2c4   :  { %v498_v9 = vpop.eup %497 }
 0x2c5   :  { %v500_v10 = vpop.eup %499  ;;  %v334_v11 = vpack.c.bf16 %v498_v9, %v494_v7 }
 0x2c6   :  { %v333_v12 = vpack.c.bf16 %v500_v10, %v496_v8 }
 0x2c8   :  { %457 = vmatpush3.bf16.msra.mxu1 %v333_v12 }
 0x2c9   :  { %458 = vmatprep.subr.bf16.mxu1 %v526_v58 }
 0x2cc   :  { %459 = vmatpush3.bf16.msra.mxu1 %v334_v11 }
 0x2cf   :  { %461 = vmatmul.mubr.msk.bf16.vlgmr.msra.gmra.mrb[4].mxu1 %vm171_vm2, %v332_v13 }
 0x3a2   :  { %v378_v15 = vpop.f32.mrb[4].mxu1 }
 0x3a3   :  { %v379_v16 = vadd.f32 %v378_v15, %v339_v14  ;;  %v462_v17 = vpop.f32.mrb[5].mxu1 }
 0x3a4   :  { %v381_v18 = vpop.f32.mrb[6].mxu1 }
 0x3a5   :  { %384 = vst [vmem:[#allocation2] sm:$0x7] %v379_v16  ;;  %v463_v19 = vpop.f32.mrb[7].mxu1 }
 0x3a6   :  { %512 = shalt.err (!%p509_p4)
}
 0x3a7   :  { %s513_s16 = scalar_lea.hbm %s656_s7, 64 }
 0x3a8   :  { %p514_p5 = scmp.ne.s32.totalorder %s656_s7, %s513_s16  ;;  %p517_p6 = scmp.lt.u32.totalorder %s513_s16, %s656_s7 }
 0x3aa   :  { %p519_p7 = pnand %p517_p6, %p514_p5 }
 0x3ac   :  { %522 = shalt.err (!%p519_p7)
}
 0x3ad   :  { %394 = dma.vmem_to_hbm [thread:$0]  %s392_s13, 64, %s656_s7, [#allocation3]  }
 0x3ae   :  { %523 = dma.done.wait [#allocation3], 64  }
 0x3af   :  { %524 = vsyncadd [#allocation3], 4294967232 }
 0x3b0   :  { %398 = vsyncpa [#allocation3], 1 }

</bundles_post_ra>
